<compile_context>
chip_gen: v6e
topology: v6e:2x2x1
jax: 0.10.0
libtpu: 0.0.40
codegen_flags: <defaults>
</compile_context>

<pallas_src>
import jax
import jax.numpy as jnp
from jax import lax
from jax.experimental import pallas as pl
from jax.experimental.pallas import tpu as pltpu

_EPS = 1e-5
_SLOPE = 0.2
_VMEM_LIMIT = 48 * 1024 * 1024


def _leaky(x):
    return jnp.maximum(x, _SLOPE * x)


def _round_up(v, m):
    return ((v + m - 1) // m) * m


def _layer1(x_ref, w1_ref, b1_ref):
    """Layer 1 for one (C, tile_m) pixel tile -> f32 (ndf, tile_m).

    bf16 MXU operands (x cast in-kernel, w1 pre-cast in wrapper), f32
    accumulation, then bias + LeakyReLU in f32."""
    x = x_ref[0].astype(jnp.bfloat16)                                # (C, tm)
    h1 = jnp.dot(w1_ref[...], x, preferred_element_type=jnp.float32)  # (ndf, tm)
    return _leaky(h1 + b1_ref[...])


def _make_stats_kernel(hw, tile_m, needs_mask):
    """Pass 1: per-batch sum(h1) and Gram(h1) accumulators (no h2 materialized)."""

    def kernel(x_ref, w1_ref, b1_ref, sum_ref, gram_ref):
        @pl.when(pl.program_id(1) == 0)
        def _init():
            sum_ref[...] = jnp.zeros_like(sum_ref)
            gram_ref[...] = jnp.zeros_like(gram_ref)

        h1 = _layer1(x_ref, w1_ref, b1_ref)                          # (ndf, tm)
        if needs_mask:  # zero contributions from padded pixels (static branch)
            lane = (pl.program_id(1) * tile_m
                    + lax.broadcasted_iota(jnp.int32, (1, tile_m), 1))
            h1 = jnp.where(lane < hw, h1, 0.0)

        sum_ref[...] += jnp.sum(h1, axis=1, keepdims=True)[None]     # (1,ndf,1)
        h1_bf = h1.astype(jnp.bfloat16)
        gram = lax.dot_general(                                       # h1 @ h1^T
            h1_bf, h1_bf,
            dimension_numbers=(((1,), (1,)), ((), ())),
            preferred_element_type=jnp.float32)                       # (ndf,ndf)
        gram_ref[...] += gram[None]

    return kernel


def _apply_kernel(x_ref, w1_ref, b1_ref, w2s_ref, shift_ref, w3_ref, o_ref):
    """Pass 2: recompute h1, BN-folded layer 2 (+shift), LeakyReLU, final conv."""
    h1 = _layer1(x_ref, w1_ref, b1_ref)                               # (ndf, tm)
    h2 = jnp.dot(w2s_ref[...], h1.astype(jnp.bfloat16),
                 preferred_element_type=jnp.float32)                  # (2ndf, tm)
    h2 = _leaky(h2 + shift_ref[...])                                  # BN folded into w2s/shift
    # layer 3: VPU broadcast-multiply + sublane reduce -> lane-dense (1, tm)
    out = jnp.sum(h2 * w3_ref[...], axis=0, keepdims=True)
    o_ref[0] = out.astype(o_ref.dtype)


def pixel_discriminator(x_nchw, params, *, tile_target=8192):
    """x_nchw: (N, C, H, W) float32.  Returns (N, 1, H, W) float32 logits."""
    w1, b1, w2, gamma, beta, w3 = params
    n, c, h, w = x_nchw.shape
    hw = h * w
    m_total = n * hw
    ndf = w1.shape[0]
    ndf2 = w2.shape[0]

    # Bounded tile (multiple of 128); pad HW to a multiple of it so VMEM usage
    # is constant regardless of spatial size.  Pad pixels masked out of stats.
    tile_m = min(_round_up(hw, 128), _round_up(tile_target, 128))
    hw_pad = _round_up(hw, tile_m)
    n_tiles = hw_pad // tile_m
    needs_mask = hw_pad != hw
    grid = (n, n_tiles)

    x3d = x_nchw.reshape(n, c, hw)          # free reshape: pixels on lane axis
    if needs_mask:
        x3d = jnp.pad(x3d, ((0, 0), (0, 0), (0, hw_pad - hw)))

    w1_bf = w1.astype(jnp.bfloat16)

    x_spec = pl.BlockSpec((1, c, tile_m), lambda i, t: (i, 0, t))

    def const_spec(shape):                  # small resident operand, DMA'd once
        return pl.BlockSpec(shape, lambda i, t: (0,) * len(shape))

    m_pad = n * hw_pad
    p1_flops = 2 * m_pad * (c * ndf + ndf * ndf)
    p2_flops = 2 * m_pad * (c * ndf + ndf * ndf2 + ndf2)

    # ---- pass 1: per-batch sum(h1) and Gram(h1) ------------------------------
    sums, grams = pl.pallas_call(
        _make_stats_kernel(hw, tile_m, needs_mask),
        out_shape=(jax.ShapeDtypeStruct((n, ndf, 1), jnp.float32),
                   jax.ShapeDtypeStruct((n, ndf, ndf), jnp.float32)),
        grid=grid,
        in_specs=[x_spec,
                  const_spec((ndf, c)),
                  const_spec((ndf, 1))],
        out_specs=(pl.BlockSpec((1, ndf, 1), lambda i, t: (i, 0, 0)),
                   pl.BlockSpec((1, ndf, ndf), lambda i, t: (i, 0, 0))),
        compiler_params=pltpu.CompilerParams(
            dimension_semantics=("parallel", "arbitrary"),
            vmem_limit_bytes=_VMEM_LIMIT),
        cost_estimate=pl.CostEstimate(flops=p1_flops, transcendentals=0,
                                      bytes_accessed=4 * m_pad * c),
    )(x3d, w1_bf, b1)

    # ---- tiny epilogue: recover h2 stats from Gram, fold BN into w2/shift ----
    sum_h1 = jnp.sum(sums, axis=0)                                    # (ndf, 1)
    gram = jnp.sum(grams, axis=0)                                     # (ndf, ndf)
    sum_h2 = w2 @ sum_h1                                              # (2ndf, 1)
    sumsq_h2 = jnp.sum((w2 @ gram) * w2, axis=1, keepdims=True)       # (2ndf, 1)
    mean = sum_h2 / m_total
    var = jnp.maximum(sumsq_h2 / m_total - mean * mean, 0.0)          # biased var
    scale = gamma * lax.rsqrt(var + _EPS)
    shift = beta - mean * scale
    w2_scaled = (scale * w2).astype(jnp.bfloat16)                     # BN scale folded

    # ---- pass 2: recompute, normalize, final conv, lane-dense store ----------
    out3d = pl.pallas_call(
        _apply_kernel,
        out_shape=jax.ShapeDtypeStruct((n, 1, hw_pad), jnp.float32),
        grid=grid,
        in_specs=[x_spec,
                  const_spec((ndf, c)),
                  const_spec((ndf, 1)),
                  const_spec((ndf2, ndf)),
                  const_spec((ndf2, 1)),
                  const_spec((ndf2, 1))],
        out_specs=pl.BlockSpec((1, 1, tile_m), lambda i, t: (i, 0, t)),
        compiler_params=pltpu.CompilerParams(
            dimension_semantics=("parallel", "parallel"),
            vmem_limit_bytes=_VMEM_LIMIT),
        cost_estimate=pl.CostEstimate(flops=p2_flops, transcendentals=0,
                                      bytes_accessed=4 * m_pad * (c + 1)),
    )(x3d, w1_bf, b1, w2_scaled, shift, w3)

    if needs_mask:
        out3d = out3d[:, :, :hw]
    return out3d.reshape(n, 1, h, w)


def init_params(key, input_nc, ndf=64):
    """Deterministic synthetic parameters in kernel layout:
       conv weights (Cout, Cin) [PyTorch (Cout, Cin, 1, 1) squeezed]; the final
       conv weight is stored transposed as (2*ndf, 1); bias/BN params (Cch, 1)."""
    k1, k2, k3, k4 = jax.random.split(key, 4)
    w1 = jax.random.normal(k1, (ndf, input_nc), jnp.float32) * 0.05
    b1 = jax.random.normal(k2, (ndf, 1), jnp.float32) * 0.05
    w2 = jax.random.normal(k3, (ndf * 2, ndf), jnp.float32) * 0.05
    gamma = jnp.ones((ndf * 2, 1), jnp.float32)   # BatchNorm2d default affine
    beta = jnp.zeros((ndf * 2, 1), jnp.float32)
    w3 = jax.random.normal(k4, (ndf * 2, 1), jnp.float32) * 0.05
    return (w1, b1, w2, gamma, beta, w3)


def _reference(x_nchw, params):
    """Pure-JAX f32 reference of the PyTorch forward (training-mode BN)."""
    w1, b1, w2, gamma, beta, w3 = params
    n, c, h, w = x_nchw.shape
    x = jnp.transpose(x_nchw, (0, 2, 3, 1)).reshape(-1, c)          # (M, C)
    h1 = x @ w1.T + b1[:, 0]
    h1 = jnp.maximum(h1, _SLOPE * h1)
    h2 = h1 @ w2.T
    mean = jnp.mean(h2, axis=0)
    var = jnp.mean((h2 - mean) ** 2, axis=0)                        # biased var
    h2 = (h2 - mean) * lax.rsqrt(var + _EPS) * gamma[:, 0] + beta[:, 0]
    h2 = jnp.maximum(h2, _SLOPE * h2)
    y = h2 @ w3                                                     # (M, 1)
    return jnp.transpose(y.reshape(n, h, w, 1), (0, 3, 1, 2))


if __name__ == "__main__":
    key = jax.random.PRNGKey(0)
    k_x, k_p = jax.random.split(key)

    N, C, H, W = 2, 4, 16, 16   # small NCHW input, input_nc = 4
    ndf = 64
    x = jax.random.normal(k_x, (N, C, H, W), jnp.float32)
    params = init_params(k_p, input_nc=C, ndf=ndf)

    fwd = jax.jit(pixel_discriminator)
    out = jax.block_until_ready(fwd(x, params))
    assert out.shape == (N, 1, H, W), out.shape

    ref = _reference(x, params)
    max_err = float(jnp.max(jnp.abs(out - ref)))
    assert jnp.allclose(out, ref, rtol=5e-2, atol=5e-2), max_err

    print("KERNEL_OK")
</pallas_src>

<mosaic_0001>
module attributes {stable_mosaic.version = 11 : i64} {
  func.func @kernel(%arg0: i32, %arg1: i32, %arg2: memref<1x4x256xf32, #tpu.memory_space<vmem>>, %arg3: memref<64x4xbf16, #tpu.memory_space<vmem>>, %arg4: memref<64x1xf32, #tpu.memory_space<vmem>>, %arg5: memref<1x64x1xf32, #tpu.memory_space<vmem>>, %arg6: memref<1x64x64xf32, #tpu.memory_space<vmem>>) attributes {dimension_semantics = [#tpu.dimension_semantics<parallel>, #tpu.dimension_semantics<arbitrary>], iteration_bounds = array<i64: 2, 1>, scalar_prefetch = 0 : i64, scratch_operands = 0 : i64, tpu.core_type = #tpu.core_type<tc>, window_params = [{transform_indices = @transform_0, window_bounds = array<i64: 1, 4, 256>}, {pipeline_mode = #tpu.pipeline_mode<synchronous>, transform_indices = @transform_1, window_bounds = array<i64: 64, 4>}, {pipeline_mode = #tpu.pipeline_mode<synchronous>, transform_indices = @transform_2, window_bounds = array<i64: 64, 1>}, {transform_indices = @transform_3, window_bounds = array<i64: 1, 64, 1>}, {transform_indices = @transform_4, window_bounds = array<i64: 1, 64, 64>}]} {
    %c0_i32 = arith.constant 0 : i32
    %0 = arith.cmpi eq, %arg1, %c0_i32 : i32
    %1 = arith.extui %0 : i1 to i32
    %c0_i32_0 = arith.constant 0 : i32
    %2 = arith.cmpi ne, %1, %c0_i32_0 : i32
    scf.if %2 {
      %cst_22 = arith.constant 0.000000e+00 : f32
      %26 = vector.broadcast %cst_22 : f32 to vector<1x64x1xf32>
      %c0_23 = arith.constant 0 : index
      %c0_24 = arith.constant 0 : index
      %c0_25 = arith.constant 0 : index
      %27 = vector.load %arg5[%c0_23, %c0_24, %c0_25] : memref<1x64x1xf32, #tpu.memory_space<vmem>>, vector<1x64x1xf32>
      tpu.vector_store %arg5[%c0_23, %c0_24, %c0_25], %26 {strides = array<i32>} : memref<1x64x1xf32, #tpu.memory_space<vmem>>, vector<1x64x1xf32>,
      %cst_26 = arith.constant 0.000000e+00 : f32
      %28 = vector.broadcast %cst_26 : f32 to vector<1x64x64xf32>
      %c0_27 = arith.constant 0 : index
      %c0_28 = arith.constant 0 : index
      %c0_29 = arith.constant 0 : index
      %29 = vector.load %arg6[%c0_27, %c0_28, %c0_29] : memref<1x64x64xf32, #tpu.memory_space<vmem>>, vector<1x64x64xf32>
      tpu.vector_store %arg6[%c0_27, %c0_28, %c0_29], %28 {strides = array<i32>} : memref<1x64x64xf32, #tpu.memory_space<vmem>>, vector<1x64x64xf32>,
    } else {
    }
    %c0 = arith.constant 0 : index
    %c0_1 = arith.constant 0 : index
    %c0_2 = arith.constant 0 : index
    %3 = vector.load %arg2[%c0, %c0_1, %c0_2] : memref<1x4x256xf32, #tpu.memory_space<vmem>>, vector<1x4x256xf32>
    %4 = vector.shape_cast %3 : vector<1x4x256xf32> to vector<4x256xf32>
    %5 = arith.truncf %4 : vector<4x256xf32> to vector<4x256xbf16>
    %c0_3 = arith.constant 0 : index
    %c0_4 = arith.constant 0 : index
    %6 = vector.load %arg3[%c0_3, %c0_4] : memref<64x4xbf16, #tpu.memory_space<vmem>>, vector<64x4xbf16>
    %cst = arith.constant dense<0.000000e+00> : vector<64x256xf32>
    %7 = tpu.matmul %6, %5, %cst {dimension_numbers = #tpu.dot_dimension_numbers<[1], [0], [0], [1], [0, 0, 1, 1], [], []>} : vector<64x4xbf16>, vector<4x256xbf16>, vector<64x256xf32> -> vector<64x256xf32>
    %c0_5 = arith.constant 0 : index
    %c0_6 = arith.constant 0 : index
    %8 = vector.load %arg4[%c0_5, %c0_6] : memref<64x1xf32, #tpu.memory_space<vmem>>, vector<64x1xf32>
    %9 = vector.broadcast %8 : vector<64x1xf32> to vector<64x256xf32>
    %10 = arith.addf %7, %9 : vector<64x256xf32>
    %cst_7 = arith.constant 2.000000e-01 : f32
    %11 = vector.broadcast %cst_7 : f32 to vector<64x256xf32>
    %12 = arith.mulf %11, %10 : vector<64x256xf32>
    %13 = arith.maximumf %10, %12 : vector<64x256xf32>
    %c0_8 = arith.constant 0 : index
    %c0_9 = arith.constant 0 : index
    %c0_10 = arith.constant 0 : index
    %14 = vector.load %arg5[%c0_8, %c0_9, %c0_10] : memref<1x64x1xf32, #tpu.memory_space<vmem>>, vector<1x64x1xf32>
    %cst_11 = arith.constant dense<0.000000e+00> : vector<64xf32>
    %15 = vector.multi_reduction <add>, %13, %cst_11 [1] : vector<64x256xf32> to vector<64xf32>
    %16 = vector.shape_cast %15 : vector<64xf32> to vector<64x1xf32>
    %17 = vector.shape_cast %16 : vector<64x1xf32> to vector<1x64x1xf32>
    %18 = arith.addf %14, %17 : vector<1x64x1xf32>
    %c0_12 = arith.constant 0 : index
    %c0_13 = arith.constant 0 : index
    %c0_14 = arith.constant 0 : index
    %19 = vector.load %arg5[%c0_12, %c0_13, %c0_14] : memref<1x64x1xf32, #tpu.memory_space<vmem>>, vector<1x64x1xf32>
    tpu.vector_store %arg5[%c0_12, %c0_13, %c0_14], %18 {strides = array<i32>} : memref<1x64x1xf32, #tpu.memory_space<vmem>>, vector<1x64x1xf32>,
    %20 = arith.truncf %13 : vector<64x256xf32> to vector<64x256xbf16>
    %cst_15 = arith.constant dense<0.000000e+00> : vector<64x64xf32>
    %21 = tpu.matmul %20, %20, %cst_15 {dimension_numbers = #tpu.dot_dimension_numbers<[1], [1], [0], [0], [0, 0, 1, 0], [], []>} : vector<64x256xbf16>, vector<64x256xbf16>, vector<64x64xf32> -> vector<64x64xf32>
    %c0_16 = arith.constant 0 : index
    %c0_17 = arith.constant 0 : index
    %c0_18 = arith.constant 0 : index
    %22 = vector.load %arg6[%c0_16, %c0_17, %c0_18] : memref<1x64x64xf32, #tpu.memory_space<vmem>>, vector<1x64x64xf32>
    %23 = vector.shape_cast %21 : vector<64x64xf32> to vector<1x64x64xf32>
    %24 = arith.addf %22, %23 : vector<1x64x64xf32>
    %c0_19 = arith.constant 0 : index
    %c0_20 = arith.constant 0 : index
    %c0_21 = arith.constant 0 : index
    %25 = vector.load %arg6[%c0_19, %c0_20, %c0_21] : memref<1x64x64xf32, #tpu.memory_space<vmem>>, vector<1x64x64xf32>
    tpu.vector_store %arg6[%c0_19, %c0_20, %c0_21], %24 {strides = array<i32>} : memref<1x64x64xf32, #tpu.memory_space<vmem>>, vector<1x64x64xf32>,
    return
  }
  func.func @transform_0(%arg0: i32, %arg1: i32) -> (i32, i32, i32) {
    %c0_i32 = arith.constant 0 : i32
    %c0_i32_0 = arith.constant 0 : i32
    return %arg0, %c0_i32, %arg1 : i32, i32, i32
  }
  func.func @transform_1(%arg0: i32, %arg1: i32) -> (i32, i32) {
    %c0_i32 = arith.constant 0 : i32
    %c0_i32_0 = arith.constant 0 : i32
    %c0_i32_1 = arith.constant 0 : i32
    return %c0_i32, %c0_i32_0 : i32, i32
  }
  func.func @transform_2(%arg0: i32, %arg1: i32) -> (i32, i32) {
    %c0_i32 = arith.constant 0 : i32
    %c0_i32_0 = arith.constant 0 : i32
    %c0_i32_1 = arith.constant 0 : i32
    return %c0_i32, %c0_i32_0 : i32, i32
  }
  func.func @transform_3(%arg0: i32, %arg1: i32) -> (i32, i32, i32) {
    %c0_i32 = arith.constant 0 : i32
    %c0_i32_0 = arith.constant 0 : i32
    %c0_i32_1 = arith.constant 0 : i32
    return %arg0, %c0_i32, %c0_i32_0 : i32, i32, i32
  }
  func.func @transform_4(%arg0: i32, %arg1: i32) -> (i32, i32, i32) {
    %c0_i32 = arith.constant 0 : i32
    %c0_i32_0 = arith.constant 0 : i32
    %c0_i32_1 = arith.constant 0 : i32
    return %arg0, %c0_i32, %c0_i32_0 : i32, i32, i32
  }
}

module attributes {stable_mosaic.version = 11 : i64} {
  func.func @_apply_kernel(%arg0: i32, %arg1: i32, %arg2: memref<1x4x256xf32, #tpu.memory_space<vmem>>, %arg3: memref<64x4xbf16, #tpu.memory_space<vmem>>, %arg4: memref<64x1xf32, #tpu.memory_space<vmem>>, %arg5: memref<128x64xbf16, #tpu.memory_space<vmem>>, %arg6: memref<128x1xf32, #tpu.memory_space<vmem>>, %arg7: memref<128x1xf32, #tpu.memory_space<vmem>>, %arg8: memref<1x1x256xf32, #tpu.memory_space<vmem>>) attributes {dimension_semantics = [#tpu.dimension_semantics<parallel>, #tpu.dimension_semantics<parallel>], iteration_bounds = array<i64: 2, 1>, scalar_prefetch = 0 : i64, scratch_operands = 0 : i64, tpu.core_type = #tpu.core_type<tc>, window_params = [{transform_indices = @transform_0, window_bounds = array<i64: 1, 4, 256>}, {pipeline_mode = #tpu.pipeline_mode<synchronous>, transform_indices = @transform_1, window_bounds = array<i64: 64, 4>}, {pipeline_mode = #tpu.pipeline_mode<synchronous>, transform_indices = @transform_2, window_bounds = array<i64: 64, 1>}, {pipeline_mode = #tpu.pipeline_mode<synchronous>, transform_indices = @transform_3, window_bounds = array<i64: 128, 64>}, {pipeline_mode = #tpu.pipeline_mode<synchronous>, transform_indices = @transform_4, window_bounds = array<i64: 128, 1>}, {pipeline_mode = #tpu.pipeline_mode<synchronous>, transform_indices = @transform_5, window_bounds = array<i64: 128, 1>}, {transform_indices = @transform_6, window_bounds = array<i64: 1, 1, 256>}]} {
    %c0 = arith.constant 0 : index
    %c0_0 = arith.constant 0 : index
    %c0_1 = arith.constant 0 : index
    %0 = vector.load %arg2[%c0, %c0_0, %c0_1] : memref<1x4x256xf32, #tpu.memory_space<vmem>>, vector<1x4x256xf32>
    %1 = vector.shape_cast %0 : vector<1x4x256xf32> to vector<4x256xf32>
    %2 = arith.truncf %1 : vector<4x256xf32> to vector<4x256xbf16>
    %c0_2 = arith.constant 0 : index
    %c0_3 = arith.constant 0 : index
    %3 = vector.load %arg3[%c0_2, %c0_3] : memref<64x4xbf16, #tpu.memory_space<vmem>>, vector<64x4xbf16>
    %cst = arith.constant dense<0.000000e+00> : vector<64x256xf32>
    %4 = tpu.matmul %3, %2, %cst {dimension_numbers = #tpu.dot_dimension_numbers<[1], [0], [0], [1], [0, 0, 1, 1], [], []>} : vector<64x4xbf16>, vector<4x256xbf16>, vector<64x256xf32> -> vector<64x256xf32>
    %c0_4 = arith.constant 0 : index
    %c0_5 = arith.constant 0 : index
    %5 = vector.load %arg4[%c0_4, %c0_5] : memref<64x1xf32, #tpu.memory_space<vmem>>, vector<64x1xf32>
    %6 = vector.broadcast %5 : vector<64x1xf32> to vector<64x256xf32>
    %7 = arith.addf %4, %6 : vector<64x256xf32>
    %cst_6 = arith.constant 2.000000e-01 : f32
    %8 = vector.broadcast %cst_6 : f32 to vector<64x256xf32>
    %9 = arith.mulf %8, %7 : vector<64x256xf32>
    %10 = arith.maximumf %7, %9 : vector<64x256xf32>
    %c0_7 = arith.constant 0 : index
    %c0_8 = arith.constant 0 : index
    %11 = vector.load %arg5[%c0_7, %c0_8] : memref<128x64xbf16, #tpu.memory_space<vmem>>, vector<128x64xbf16>
    %12 = arith.truncf %10 : vector<64x256xf32> to vector<64x256xbf16>
    %cst_9 = arith.constant dense<0.000000e+00> : vector<128x256xf32>
    %13 = tpu.matmul %11, %12, %cst_9 {dimension_numbers = #tpu.dot_dimension_numbers<[1], [0], [0], [1], [0, 0, 1, 1], [], []>} : vector<128x64xbf16>, vector<64x256xbf16>, vector<128x256xf32> -> vector<128x256xf32>
    %c0_10 = arith.constant 0 : index
    %c0_11 = arith.constant 0 : index
    %14 = vector.load %arg6[%c0_10, %c0_11] : memref<128x1xf32, #tpu.memory_space<vmem>>, vector<128x1xf32>
    %15 = vector.broadcast %14 : vector<128x1xf32> to vector<128x256xf32>
    %16 = arith.addf %13, %15 : vector<128x256xf32>
    %cst_12 = arith.constant 2.000000e-01 : f32
    %17 = vector.broadcast %cst_12 : f32 to vector<128x256xf32>
    %18 = arith.mulf %17, %16 : vector<128x256xf32>
    %19 = arith.maximumf %16, %18 : vector<128x256xf32>
    %c0_13 = arith.constant 0 : index
    %c0_14 = arith.constant 0 : index
    %20 = vector.load %arg7[%c0_13, %c0_14] : memref<128x1xf32, #tpu.memory_space<vmem>>, vector<128x1xf32>
    %21 = vector.broadcast %20 : vector<128x1xf32> to vector<128x256xf32>
    %22 = arith.mulf %19, %21 : vector<128x256xf32>
    %cst_15 = arith.constant dense<0.000000e+00> : vector<256xf32>
    %23 = vector.multi_reduction <add>, %22, %cst_15 [0] : vector<128x256xf32> to vector<256xf32>
    %24 = vector.shape_cast %23 : vector<256xf32> to vector<1x256xf32>
    %c0_16 = arith.constant 0 : index
    %c0_17 = arith.constant 0 : index
    %c0_18 = arith.constant 0 : index
    %25 = vector.load %arg8[%c0_16, %c0_17, %c0_18] : memref<1x1x256xf32, #tpu.memory_space<vmem>>, vector<1x1x256xf32>
    %26 = vector.shape_cast %25 : vector<1x1x256xf32> to vector<1x256xf32>
    %27 = vector.shape_cast %24 : vector<1x256xf32> to vector<1x1x256xf32>
    tpu.vector_store %arg8[%c0_16, %c0_17, %c0_18], %27 {strides = array<i32>} : memref<1x1x256xf32, #tpu.memory_space<vmem>>, vector<1x1x256xf32>,
    return
  }
  func.func @transform_0(%arg0: i32, %arg1: i32) -> (i32, i32, i32) {
    %c0_i32 = arith.constant 0 : i32
    %c0_i32_0 = arith.constant 0 : i32
    return %arg0, %c0_i32, %arg1 : i32, i32, i32
  }
  func.func @transform_1(%arg0: i32, %arg1: i32) -> (i32, i32) {
    %c0_i32 = arith.constant 0 : i32
    %c0_i32_0 = arith.constant 0 : i32
    %c0_i32_1 = arith.constant 0 : i32
    return %c0_i32, %c0_i32_0 : i32, i32
  }
  func.func @transform_2(%arg0: i32, %arg1: i32) -> (i32, i32) {
    %c0_i32 = arith.constant 0 : i32
    %c0_i32_0 = arith.constant 0 : i32
    %c0_i32_1 = arith.constant 0 : i32
    return %c0_i32, %c0_i32_0 : i32, i32
  }
  func.func @transform_3(%arg0: i32, %arg1: i32) -> (i32, i32) {
    %c0_i32 = arith.constant 0 : i32
    %c0_i32_0 = arith.constant 0 : i32
    %c0_i32_1 = arith.constant 0 : i32
    return %c0_i32, %c0_i32_0 : i32, i32
  }
  func.func @transform_4(%arg0: i32, %arg1: i32) -> (i32, i32) {
    %c0_i32 = arith.constant 0 : i32
    %c0_i32_0 = arith.constant 0 : i32
    %c0_i32_1 = arith.constant 0 : i32
    return %c0_i32, %c0_i32_0 : i32, i32
  }
  func.func @transform_5(%arg0: i32, %arg1: i32) -> (i32, i32) {
    %c0_i32 = arith.constant 0 : i32
    %c0_i32_0 = arith.constant 0 : i32
    %c0_i32_1 = arith.constant 0 : i32
    return %c0_i32, %c0_i32_0 : i32, i32
  }
  func.func @transform_6(%arg0: i32, %arg1: i32) -> (i32, i32, i32) {
    %c0_i32 = arith.constant 0 : i32
    %c0_i32_0 = arith.constant 0 : i32
    return %arg0, %c0_i32, %arg1 : i32, i32, i32
  }
}

</mosaic_0001>

<bundles_post_ra>
// kernel: pixel_discriminator.2
= control target key start
LH: loop header
LB: loop body
LE: loop exit
PB: predicated region body
PF: predicated region fallthrough
CT: control target
= control target key end

     0   :  { %s835_s15 = smov 0   ;;  %s837_s16 = smov 0   ;;  %s1048_s0 = inlined_call_operand.vmem [shape: f32[2,4,256], index: 0, kind: input, shape index: {}]   ;;  %s1049_s1 = inlined_call_operand.vmem [shape: bf16[64,4], index: 1, kind: input, shape index: {}]   ;;  %s1050_s2 = inlined_call_operand.vmem [shape: f32[64,1], index: 2, kind: input, shape index: {}]   ;;  %s1051_s3 = inlined_call_operand.vmem [shape: f32[2,64,1], index: 3, kind: output, shape index: {0}]   ;;  %s1052_s4 = inlined_call_operand.vmem [shape: f32[2,64,64], index: 4, kind: output, shape index: {1}]  }
   0x1   :  { %s839_s17 = smov 0  }
   0x2 LB: > { %s27_s18 = sadd.s32 1, %s802_s16  ;;  %p722_p0 = scmp.ge.s32.totalorder %s806_s17, 1  ;;  %s806_s17 = sphi %s839_s17, %s15_s17   ;;  %s802_s16 = sphi %s837_s16, %s1054_s16   ;;  %s798_s15 = sphi %s835_s15, %s1053_s15  }
   0x3   : > { %p29_p1 = scmp.ge.s32.totalorder %s27_s18, 2  ;;  %p184_p2 = scmp.lt.s32.totalorder %s806_s17, 3 }
   0x5   : > { %s1056_s18 = smov (%p29_p1, %s27_s18), 0  ;;  %p185_p3 = pnand %p722_p0, %p184_p2 }
   0x6   : > { %p220_p4 = scmp.lt.s32.totalorder (!%p185_p3), %s798_s15, 1 }
   0x7   : > { %188 = sbr.rel (%p185_p3) target bundleno = 504 (0x1f8), region = 32 }
   0xc   : > { %v808_v0 = vmov 0   ;;  %s1058_s15 = smov (!%p220_p4, %s798_s15), 1  ;;  %v282_v1 = vld [vmem:[%s1050_s2 + $0x30] sm:$0xff]  ;;  %v280_v2 = vld [vmem:[%s1050_s2 + $0x20] sm:$0xff]  ;;  %vm357_vm0 = vcmask 1041408   ;;  %v283_v4 = vld [vmem:[%s1050_s2 + $0x38] sm:$0xff] }
   0xd   : > { %396 = vmatprep.mubr.bf16.mxu0 %v808_v0  ;;  %777 = vset.pattern.permute.xlu0 %v808_v0  ;;  %s740_s19 = sshll.u32 %s1058_s15, 3  ;;  %v281_v7 = vld [vmem:[%s1050_s2 + $0x28] sm:$0xff]  ;;  %v278_v10 = vld [vmem:[%s1050_s2 + $0x10] sm:$0xff]  ;;  %v780_v11 = vld [vmem:[%s1049_s1] sm:$0xff]   ;;  %vm344_vm1 = vcmask 31744   ;;  %s741_s25 = sshll.u32 %s1058_s15, 6 }
   0xe   : > { %778 = vset.pattern.permute.xlu1 %v808_v0  ;;  %s227_s24 = scalar_lea.vmem %s1048_s0, %s740_s19  ;;  %316 = vperm.xlu0 %777, %v282_v1   ;;  %v279_v12 = vld [vmem:[%s1050_s2 + $0x18] sm:$0xff]  ;;  %v276_v13 = vld [vmem:[%s1050_s2] sm:$0xff]  ;;  %v277_v14 = vld [vmem:[%s1050_s2 + $0x8] sm:$0xff]  ;;  %s905_s28 = scalar_lea.vmem %s1051_s3, %s741_s25  ;;  %vm244_vm2 = vcmask 7168   ;;  %v809_v18 = vmov 0.0   ;;  %vm253_vm3 = vcmask 523264  }
   0xf   : > { %v262_v3 = vld [vmem:[%s227_s24] sm:$0xff]  ;;  %306 = vperm.xlu1 %778, %v280_v2   ;;  %v781_v15 = vld [vmem:[%s1049_s1 + $0x8] sm:$0xff]   ;;  %v782_v16 = vld [vmem:[%s1049_s1 + $0x10] sm:$0xff]   ;;  %245 = vst.msk [vmem:[%s905_s28] sm:$0xff] %vm244_vm2, %v809_v18  ;;  %s959_s5 = scalar_lea.vmem %s1052_s4, %s741_s25 }
  0x10   : > { %v264_v5 = vcombine.high %v262_v3, %v262_v3  ;;  %v266_v6 = vpack.c.bf16 %v262_v3, %v262_v3  ;;  %v783_v17 = vld [vmem:[%s1049_s1 + $0x18] sm:$0xff]   ;;  %246 = vst.msk [vmem:[%s905_s28 + $0x8] sm:$0xff] %vm244_vm2, %v809_v18  ;;  %247 = vst.msk [vmem:[%s905_s28 + $0x10] sm:$0xff] %vm244_vm2, %v809_v18 }
  0x11   : > { %248 = vst.msk [vmem:[%s905_s28 + $0x18] sm:$0xff] %vm244_vm2, %v809_v18  ;;  %249 = vst.msk [vmem:[%s905_s28 + $0x20] sm:$0xff] %vm244_vm2, %v809_v18 }
  0x12   : > { %v267_v8 = vpack.c.bf16 %v264_v5, %v264_v5  ;;  %v359_v9 = vsel %vm357_vm0, %v266_v6, 0  ;;  %321 = vperm.xlu0 %777, %v283_v4   ;;  %250 = vst.msk [vmem:[%s905_s28 + $0x28] sm:$0xff] %vm244_vm2, %v809_v18  ;;  %251 = vst.msk [vmem:[%s905_s28 + $0x30] sm:$0xff] %vm244_vm2, %v809_v18 }
  0x13   : > { %311 = vperm.xlu1 %778, %v281_v7   ;;  %252 = vst.msk [vmem:[%s905_s28 + $0x38] sm:$0xff] %vm244_vm2, %v809_v18 }
  0x14   : > { %733 = vmatprep.subr.msk.bf16.mxu0 %vm357_vm0, %v267_v8  ;;  %254 = vst.msk [vmem:[%s959_s5] sm:$0xff] %vm253_vm3, %v809_v18  ;;  %255 = vst.msk [vmem:[%s959_s5 + $0x8] sm:$0xff] %vm253_vm3, %v809_v18 }
  0x15   : > { %379 = vmatpush1.bf16.msra.mxu0 %v359_v9  ;;  %256 = vst.msk [vmem:[%s959_s5 + $0x10] sm:$0xff] %vm253_vm3, %v809_v18  ;;  %257 = vst.msk [vmem:[%s959_s5 + $0x18] sm:$0xff] %vm253_vm3, %v809_v18 }
  0x16   : > { %296 = vperm.xlu0 %777, %v278_v10   ;;  %258 = vst.msk [vmem:[%s959_s5 + $0x20] sm:$0xff] %vm253_vm3, %v809_v18  ;;  %259 = vst.msk [vmem:[%s959_s5 + $0x28] sm:$0xff] %vm253_vm3, %v809_v18 }
  0x17   : > { %301 = vperm.xlu1 %778, %v279_v12   ;;  %260 = vst.msk [vmem:[%s959_s5 + $0x30] sm:$0xff] %vm253_vm3, %v809_v18  ;;  %261 = vst.msk [vmem:[%s959_s5 + $0x38] sm:$0xff] %vm253_vm3, %v809_v18  ;;  %v469_v18 = vld [vmem:[%s905_s28] sm:$0xff] }
  0x18   : > { %734 = vmatmul.mubr.msk.bf16.vlgmr.msra.gmra.mxu0 %vm344_vm1, %v780_v11 }
  0x19   : > { %406 = vmatprep.mubr.bf16.mxu0 %v808_v0 }
  0x1a   : > { %286 = vperm.xlu0 %777, %v276_v13  }
  0x1b   : > { %291 = vperm.xlu1 %778, %v277_v14  }
  0x20   : > { %735 = vmatmul.mubr.msk.bf16.gmra.mxu0 %vm344_vm1, %v781_v15 }
  0x21   : > { %416 = vmatprep.mubr.bf16.mxu0 %v808_v0 }
  0x28   : > { %736 = vmatmul.mubr.msk.bf16.gmra.mxu0 %vm344_vm1, %v782_v16 }
  0x29   : > { %426 = vmatprep.mubr.bf16.mxu0 %v808_v0 }
  0x30   : > { %737 = vmatmul.mubr.msk.bf16.gmra.mxu0 %vm344_vm1, %v783_v17 }
  0x89   : > { %v931_v19 = vpop.permute.xlu0 %316 }
  0x8a   : > { %v307_v20 = vpop.permute.xlu1 %306 }
  0x8d   : > { %v933_v21 = vpop.permute.xlu0 %321 }
  0x8e   : > { %v312_v22 = vpop.permute.xlu1 %311 }
  0x91   : > { %v297_v23 = vpop.permute.xlu0 %296 }
  0x92   : > { %v302_v24 = vpop.permute.xlu1 %301 }
  0x95   : > { %v287_v25 = vpop.permute.xlu0 %286 }
  0x96   : > { %v292_v29 = vpop.permute.xlu1 %291 }
  0xd8   : > { %v398_v26 = vpop.f32.mrf.mxu0 }
  0xd9   : > { %v399_v27 = vadd.f32 %v398_v26, %v287_v25 }
  0xda   : > { %v400_v28 = vpop.f32.mrf.mxu0 }
  0xdb   : > { %v437_v30 = vmul.f32 0.2, %v399_v27  ;;  %v401_v31 = vadd.f32 %v400_v28, %v287_v25 }
  0xdc   : > { %v402_v32 = vpop.f32.mrf.mxu0 }
  0xdd   : > { %v438_v33 = vmul.f32 0.2, %v401_v31  ;;  %v403_v34 = vadd.f32 %v402_v32, %v292_v29  ;;  %v935_v36 = vmax.f32 %v399_v27, %v437_v30 }
  0xde   : > { %v404_v35 = vpop.f32.mrf.mxu0 }
  0xdf   : > { %v454_v37 = vmax.f32 %v401_v31, %v438_v33  ;;  %v439_v38 = vmul.f32 0.2, %v403_v34  ;;  %v405_v39 = vadd.f32 %v404_v35, %v292_v29 }
  0xe0   : > { %v408_v40 = vpop.f32.mrf.mxu0 }
  0xe1   : > { %v440_v41 = vmul.f32 0.2, %v405_v39  ;;  %v409_v42 = vadd.f32 %v408_v40, %v297_v23  ;;  %v477_v43 = vadd.f32 %v454_v37, %v935_v36  ;;  %v938_v45 = vmax.f32 %v403_v34, %v439_v38 }
  0xe2   : > { %v410_v44 = vpop.f32.mrf.mxu0 }
  0xe3   : > { %v456_v46 = vmax.f32 %v405_v39, %v440_v41  ;;  %v441_v47 = vmul.f32 0.2, %v409_v42  ;;  %v411_v48 = vadd.f32 %v410_v44, %v297_v23  ;;  %478 = vadd.xlane.f32.xlu0 %v477_v43  ;;  %v518_v44 = vpack.c.bf16 %v938_v45, %v935_v36 }
  0xe4   : > { %v412_v49 = vpop.f32.mrf.mxu0 }
  0xe5   : > { %v442_v50 = vmul.f32 0.2, %v411_v48  ;;  %v413_v51 = vadd.f32 %v412_v49, %v302_v24  ;;  %v480_v52 = vadd.f32 %v456_v46, %v938_v45  ;;  %v941_v54 = vpack.c.bf16 %v456_v46, %v454_v37  ;;  %v471_v49 = vld [vmem:[%s905_s28 + $0x10] sm:$0xff] }
  0xe6   : > { %v414_v53 = vpop.f32.mrf.mxu0  ;;  %v943_v55 = vmax.f32 %v409_v42, %v441_v47 }
  0xe7   : > { %v458_v56 = vmax.f32 %v411_v48, %v442_v50  ;;  %v415_v57 = vadd.f32 %v414_v53, %v302_v24  ;;  %481 = vadd.xlane.f32.xlu1 %v480_v52  ;;  %v443_v58 = vmul.f32 0.2, %v413_v51  ;;  %558 = vmatprep.mubr.bf16.mxu0 %v941_v54  ;;  %v470_v48 = vld [vmem:[%s905_s28 + $0x8] sm:$0xff]  ;;  %v472_v52 = vld [vmem:[%s905_s28 + $0x18] sm:$0xff] }
  0xe8   : > { %v418_v59 = vpop.f32.mrf.mxu0 }
  0xe9   : > { %v444_v60 = vmul.f32 0.2, %v415_v57  ;;  %v419_v61 = vadd.f32 %v418_v59, %v307_v20  ;;  %v483_v62 = vadd.f32 %v458_v56, %v943_v55  ;;  %v947_v3 = vmax.f32 %v413_v51, %v443_v58  ;;  %v474_v58 = vld [vmem:[%s905_s28 + $0x28] sm:$0xff] }
  0xea   : > { %v420_v63 = vpop.f32.mrf.mxu0 }
  0xeb   : > { %v460_v0 = vmax.f32 %v415_v57, %v444_v60  ;;  %v445_v1 = vmul.f32 0.2, %v419_v61  ;;  %v421_v2 = vadd.f32 %v420_v63, %v307_v20  ;;  %484 = vadd.xlane.f32.xlu0 %v483_v62 }
  0xec   : > { %v422_v4 = vpop.f32.mrf.mxu0 }
  0xed   : > { %v446_v5 = vmul.f32 0.2, %v421_v2  ;;  %v423_v6 = vadd.f32 %v422_v4, %v312_v22  ;;  %v521_v7 = vpack.c.bf16 %v460_v0, %v458_v56  ;;  %v486_v9 = vadd.f32 %v460_v0, %v947_v3  ;;  %v476_v0 = vld [vmem:[%s905_s28 + $0x38] sm:$0xff]  ;;  %v593_v4 = vld [vmem:[%s959_s5 + $0x10] sm:$0xff] }
  0xee   : > { %v424_v8 = vpop.f32.mrf.mxu0  ;;  %v461_v10 = vmax.f32 %v419_v61, %v445_v1  ;;  %v475_v61 = vld [vmem:[%s905_s28 + $0x30] sm:$0xff] }
  0xef   : > { %v462_v11 = vmax.f32 %v421_v2, %v446_v5  ;;  %v447_v12 = vmul.f32 0.2, %v423_v6  ;;  %v425_v13 = vadd.f32 %v424_v8, %v312_v22  ;;  %566 = vmatprep.mubr.bf16.mxu1 %v521_v7  ;;  %487 = vadd.xlane.f32.xlu0 %v486_v9 }
  0xf0   : > { %v428_v14 = vpop.f32.mrf.mxu0 }
  0xf1   : > { %v448_v15 = vmul.f32 0.2, %v425_v13  ;;  %v429_v16 = vadd.f32 %v428_v14, %v931_v19  ;;  %v489_v17 = vadd.f32 %v462_v11, %v461_v10  ;;  %v463_v23 = vmax.f32 %v423_v6, %v447_v12  ;;  %v594_v12 = vld [vmem:[%s959_s5 + $0x18] sm:$0xff] }
  0xf2   : > { %v430_v20 = vpop.f32.mrf.mxu0 }
  0xf3   : > { %v464_v24 = vmax.f32 %v425_v13, %v448_v15  ;;  %v449_v25 = vmul.f32 0.2, %v429_v16  ;;  %v431_v26 = vadd.f32 %v430_v20, %v931_v19  ;;  %490 = vadd.xlane.f32.xlu1 %v489_v17  ;;  %v522_v43 = vpack.c.bf16 %v463_v23, %v461_v10  ;;  %v592_v10 = vld [vmem:[%s959_s5 + $0x8] sm:$0xff] }
  0xf4   : > { %v432_v27 = vpop.f32.mrf.mxu0 }
  0xf5   : > { %v450_v28 = vmul.f32 0.2, %v431_v26  ;;  %v433_v29 = vadd.f32 %v432_v27, %v933_v21  ;;  %v492_v30 = vadd.f32 %v464_v24, %v463_v23  ;;  %v465_v31 = vmax.f32 %v429_v16, %v449_v25  ;;  %v595_v23 = vld [vmem:[%s959_s5 + $0x20] sm:$0xff]  ;;  %v596_v27 = vld [vmem:[%s959_s5 + $0x28] sm:$0xff] }
  0xf6   : > { %v434_v22 = vpop.f32.mrf.mxu0  ;;  %v523_v42 = vpack.c.bf16 %v464_v24, %v462_v11 }
  0xf7   : > { %v466_v32 = vmax.f32 %v431_v26, %v450_v28  ;;  %v451_v33 = vmul.f32 0.2, %v433_v29  ;;  %v435_v34 = vadd.f32 %v434_v22, %v933_v21  ;;  %493 = vadd.xlane.f32.xlu0 %v492_v30  ;;  %v520_v21 = vpack.c.bf16 %v947_v3, %v943_v55  ;;  %v473_v55 = vld [vmem:[%s905_s28 + $0x20] sm:$0xff]  ;;  %v597_v22 = vld [vmem:[%s959_s5 + $0x30] sm:$0xff] }
  0xf8   : > { %v591_v3 = vld [vmem:[%s959_s5] sm:$0xff] }
  0xf9   : > { %v452_v35 = vmul.f32 0.2, %v435_v34  ;;  %v495_v37 = vadd.f32 %v466_v32, %v465_v31  ;;  %v467_v38 = vmax.f32 %v433_v29, %v451_v33 }
  0xfb   : > { %v468_v39 = vmax.f32 %v435_v34, %v452_v35  ;;  %496 = vadd.xlane.f32.xlu1 %v495_v37  ;;  %v524_v41 = vpack.c.bf16 %v467_v38, %v465_v31  ;;  %v598_v34 = vld [vmem:[%s959_s5 + $0x38] sm:$0xff] }
  0xfd   : > { %v525_v19 = vpack.c.bf16 %v468_v39, %v466_v32  ;;  %v498_v40 = vadd.f32 %v468_v39, %v467_v38 }
  0xff   : > { %534 = vmatprep.subr.bf16.mxu0 %v525_v19  ;;  %743 = vmatprep.subr.bf16.mxu1 %v525_v19 }
 0x100   : > { %499 = vadd.xlane.f32.xlu0 %v498_v40  ;;  %535 = vmatpush1.bf16.xpose.msra.mxu0 %v524_v41 }
 0x101   : > { %747 = vmatpush1.bf16.xpose.msra.mxu1 %v524_v41  ;;  %536 = vmatprep.subr.bf16.mxu0 %v523_v42 }
 0x102   : > { %744 = vmatprep.subr.bf16.mxu1 %v523_v42 }
 0x108   : > { %537 = vmatpush1.bf16.xpose.msra.mxu0 %v522_v43 }
 0x109   : > { %748 = vmatpush1.bf16.xpose.msra.mxu1 %v522_v43  ;;  %538 = vmatprep.subr.bf16.mxu0 %v521_v7 }
 0x10a   : > { %745 = vmatprep.subr.bf16.mxu1 %v521_v7 }
 0x110   : > { %539 = vmatpush1.bf16.xpose.msra.mxu0 %v520_v21 }
 0x111   : > { %749 = vmatpush1.bf16.xpose.msra.mxu1 %v520_v21  ;;  %540 = vmatprep.subr.bf16.mxu0 %v941_v54 }
 0x112   : > { %746 = vmatprep.subr.bf16.mxu1 %v941_v54 }
 0x118   : > { %541 = vmatpush1.bf16.xpose.msra.mxu0 %v518_v44 }
 0x119   : > { %750 = vmatpush1.bf16.xpose.msra.mxu1 %v518_v44 }
 0x11f   : > { %559 = vmatmul.mubr.bf16.vlgmr.msra.gmra.mxu0 %v518_v44 }
 0x120   : > { %567 = vmatmul.mubr.bf16.vlgmr.msra.gmra.mxu1 %v520_v21 }
 0x121   : > { %574 = vmatprep.mubr.bf16.mxu1 %v523_v42 }
 0x128   : > { %575 = vmatmul.mubr.bf16.gmra.mxu1 %v522_v43 }
 0x129   : > { %582 = vmatprep.mubr.bf16.mxu1 %v525_v19 }
 0x130   : > { %583 = vmatmul.mubr.bf16.gmra.mxu1 %v524_v41 }
 0x16c   : > { %v479_v46 = vpop.xlane.xlu0 %478 }
 0x16d   : > { %v501_v47 = vadd.f32 %v479_v46, %v469_v18 }
 0x16f   : > { %510 = vst.msk [vmem:[%s905_s28] sm:$0xff] %vm244_vm2, %v501_v47 }
 0x170   : > { %v482_v36 = vpop.xlane.xlu1 %481 }
 0x171   : > { %v502_v45 = vadd.f32 %v482_v36, %v470_v48 }
 0x173   : > { %511 = vst.msk [vmem:[%s905_s28 + $0x8] sm:$0xff] %vm244_vm2, %v502_v45 }
 0x174   : > { %v485_v50 = vpop.xlane.xlu0 %484 }
 0x175   : > { %v503_v51 = vadd.f32 %v485_v50, %v471_v49 }
 0x177   : > { %512 = vst.msk [vmem:[%s905_s28 + $0x10] sm:$0xff] %vm244_vm2, %v503_v51 }
 0x178   : > { %v488_v53 = vpop.xlane.xlu0 %487 }
 0x179   : > { %v504_v54 = vadd.f32 %v488_v53, %v472_v52 }
 0x17b   : > { %513 = vst.msk [vmem:[%s905_s28 + $0x18] sm:$0xff] %vm244_vm2, %v504_v54 }
 0x17c   : > { %v491_v56 = vpop.xlane.xlu1 %490 }
 0x17d   : > { %v505_v57 = vadd.f32 %v491_v56, %v473_v55 }
 0x17f   : > { %514 = vst.msk [vmem:[%s905_s28 + $0x20] sm:$0xff] %vm244_vm2, %v505_v57 }
 0x180   : > { %v494_v59 = vpop.xlane.xlu0 %493 }
 0x181   : > { %v506_v60 = vadd.f32 %v494_v59, %v474_v58 }
 0x183   : > { %515 = vst.msk [vmem:[%s905_s28 + $0x28] sm:$0xff] %vm244_vm2, %v506_v60 }
 0x184   : > { %v497_v62 = vpop.xlane.xlu1 %496 }
 0x185   : > { %v507_v63 = vadd.f32 %v497_v62, %v475_v61 }
 0x187   : > { %516 = vst.msk [vmem:[%s905_s28 + $0x30] sm:$0xff] %vm244_vm2, %v507_v63 }
 0x189   : > { %v500_v1 = vpop.xlane.xlu0 %499 }
 0x18a   : > { %v508_v2 = vadd.f32 %v500_v1, %v476_v0 }
 0x18c   : > { %517 = vst.msk [vmem:[%s905_s28 + $0x38] sm:$0xff] %vm244_vm2, %v508_v2 }
 0x1df   : > { %v560_v5 = vpop.f32.mrf.mxu0 }
 0x1e0   : > { %v599_v6 = vadd.f32 %v591_v3, %v560_v5  ;;  %v568_v7 = vpop.f32.mrf.mxu1 }
 0x1e1   : > { %v601_v8 = vadd.f32 %v593_v4, %v568_v7  ;;  %v562_v9 = vpop.f32.mrf.mxu0 }
 0x1e2   : > { %608 = vst.msk [vmem:[%s959_s5] sm:$0xff] %vm253_vm3, %v599_v6  ;;  %v570_v11 = vpop.f32.mrf.mxu1 }
 0x1e3   : > { %610 = vst.msk [vmem:[%s959_s5 + $0x10] sm:$0xff] %vm253_vm3, %v601_v8  ;;  %v563_v13 = vpop.f32.mrf.mxu0 }
 0x1e4   : > { %v600_v14 = vadd.f32 %v592_v10, %v563_v13  ;;  %v571_v15 = vpop.f32.mrf.mxu1 }
 0x1e5   : > { %v602_v16 = vadd.f32 %v594_v12, %v571_v15  ;;  %v565_v17 = vpop.f32.mrf.mxu0 }
 0x1e6   : > { %609 = vst.msk [vmem:[%s959_s5 + $0x8] sm:$0xff] %vm253_vm3, %v600_v14  ;;  %v573_v20 = vpop.f32.mrf.mxu1 }
 0x1e7   : > { %611 = vst.msk [vmem:[%s959_s5 + $0x18] sm:$0xff] %vm253_vm3, %v602_v16 }
 0x1e8   : > { %v576_v24 = vpop.f32.mrf.mxu1 }
 0x1e9   : > { %v603_v25 = vadd.f32 %v595_v23, %v576_v24 }
 0x1ea   : > { %v578_v26 = vpop.f32.mrf.mxu1 }
 0x1eb   : > { %612 = vst.msk [vmem:[%s959_s5 + $0x20] sm:$0xff] %vm253_vm3, %v603_v25 }
 0x1ec   : > { %v579_v28 = vpop.f32.mrf.mxu1 }
 0x1ed   : > { %v604_v29 = vadd.f32 %v596_v27, %v579_v28 }
 0x1ee   : > { %v581_v30 = vpop.f32.mrf.mxu1 }
 0x1ef   : > { %613 = vst.msk [vmem:[%s959_s5 + $0x28] sm:$0xff] %vm253_vm3, %v604_v29 }
 0x1f0   : > { %v584_v31 = vpop.f32.mrf.mxu1 }
 0x1f1   : > { %v605_v32 = vadd.f32 %v597_v22, %v584_v31 }
 0x1f2   : > { %v586_v33 = vpop.f32.mrf.mxu1 }
 0x1f3   : > { %614 = vst.msk [vmem:[%s959_s5 + $0x30] sm:$0xff] %vm253_vm3, %v605_v32 }
 0x1f4   : > { %v587_v35 = vpop.f32.mrf.mxu1 }
 0x1f5   : > { %v606_v37 = vadd.f32 %v598_v34, %v587_v35 }
 0x1f6   : > { %v589_v38 = vpop.f32.mrf.mxu1 }
 0x1f7   : > { %615 = vst.msk [vmem:[%s959_s5 + $0x38] sm:$0xff] %vm253_vm3, %v606_v37 }
 0x1f8 PF: > { %s15_s17 = sadd.s32 1, %s806_s17   ;;  %s1053_s15 = smov %s802_s16 }
 0x1f9   : > { %p12_p5 = scmp.ge.s32.totalorder %s15_s17, 4   ;;  %s1054_s16 = smov %s1056_s18 }
 0x1fb   :  { %14 = sbr.rel (!%p12_p5) target bundleno = 2 (0x2), region = 78 }

// kernel: pixel_discriminator.3
= control target key start
LH: loop header
LB: loop body
LE: loop exit
PB: predicated region body
PF: predicated region fallthrough
CT: control target
= control target key end

     0   :  { %s1279_s21 = smov 0   ;;  %s1281_s22 = smov 0   ;;  %s1572_s0 = inlined_call_operand.vmem [shape: f32[2,4,256], index: 0, kind: input, shape index: {}]   ;;  %s1573_s1 = inlined_call_operand.vmem [shape: bf16[64,4], index: 1, kind: input, shape index: {}]   ;;  %s1574_s2 = inlined_call_operand.vmem [shape: f32[64,1], index: 2, kind: input, shape index: {}]   ;;  %s1575_s3 = inlined_call_operand.vmem [shape: bf16[128,64], index: 3, kind: input, shape index: {}]   ;;  %s1576_s4 = inlined_call_operand.vmem [shape: f32[128,1], index: 4, kind: input, shape index: {}]   ;;  %s1577_s5 = inlined_call_operand.vmem [shape: f32[128,1], index: 5, kind: input, shape index: {}]   ;;  %s1578_s6 = inlined_call_operand.vmem [shape: f32[2,1,256], index: 6, kind: output, shape index: {}]  }
   0x1   :  { %s1283_s23 = smov 0  }
   0x2 LB: > { %s28_s24 = sadd.s32 1, %s1236_s22  ;;  %p1137_p0 = scmp.ge.s32.totalorder %s1240_s23, 1  ;;  %s1240_s23 = sphi %s1283_s23, %s16_s23   ;;  %s1236_s22 = sphi %s1281_s22, %s1580_s22   ;;  %s1232_s21 = sphi %s1279_s21, %s1579_s21  }
   0x3   : > { %p30_p1 = scmp.ge.s32.totalorder %s28_s24, 2  ;;  %p233_p2 = scmp.lt.s32.totalorder %s1240_s23, 3 }
   0x5   : > { %s1582_s24 = smov (%p30_p1, %s28_s24), 0  ;;  %p234_p3 = pnand %p1137_p0, %p233_p2 }
   0x6   : > { %p271_p4 = scmp.lt.s32.totalorder (!%p234_p3), %s1232_s21, 1 }
   0x7   : > { %237 = sbr.rel (%p234_p3) target bundleno = 539 (0x21b), region = 44 }
   0xc   : > { %v1242_v0 = vmov 0   ;;  %s1584_s21 = smov (!%p271_p4, %s1232_s21), 1  ;;  %v310_v1 = vld [vmem:[%s1574_s2 + $0x30] sm:$0xff]  ;;  %v311_v2 = vld [vmem:[%s1574_s2 + $0x38] sm:$0xff]  ;;  %v308_v3 = vld [vmem:[%s1574_s2 + $0x20] sm:$0xff]  ;;  %vm385_vm0 = vcmask 1041408  }
   0xd   : > { %424 = vmatprep.mubr.bf16.mxu0 %v1242_v0  ;;  %1203 = vset.pattern.permute.xlu0 %v1242_v0  ;;  %s1168_s27 = sshll.u32 %s1584_s21, 3  ;;  %v309_v7 = vld [vmem:[%s1574_s2 + $0x28] sm:$0xff]  ;;  %v306_v10 = vld [vmem:[%s1574_s2 + $0x10] sm:$0xff]  ;;  %v1206_v11 = vld [vmem:[%s1573_s1] sm:$0xff]   ;;  %vm372_vm1 = vcmask 31744   ;;  %vm657_vm2 = vcmask 523264  }
   0xe   : > { %1204 = vset.pattern.permute.xlu1 %v1242_v0  ;;  %734 = vmatprep.mubr.bf16.mxu1 %v1242_v0  ;;  %s278_s30 = scalar_lea.vmem %s1572_s0, %s1168_s27  ;;  %v307_v12 = vld [vmem:[%s1574_s2 + $0x18] sm:$0xff]  ;;  %v304_v13 = vld [vmem:[%s1574_s2] sm:$0xff]  ;;  %v305_v14 = vld [vmem:[%s1574_s2 + $0x8] sm:$0xff]  ;;  %s1140_s9 = sshll.u32 %s1584_s21, 1 }
   0xf   : > { %344 = vperm.xlu0 %1203, %v310_v1   ;;  %v290_v4 = vld [vmem:[%s278_s30] sm:$0xff]  ;;  %334 = vperm.xlu1 %1204, %v308_v3   ;;  %v1207_v15 = vld [vmem:[%s1573_s1 + $0x8] sm:$0xff]   ;;  %v523_v18 = vld [vmem:[%s1576_s4 + $0x10] sm:$0xff]  ;;  %s287_s12 = scalar_lea.vmem %s1578_s6, %s1140_s9 }
  0x10   : > { %v292_v5 = vcombine.high %v290_v4, %v290_v4  ;;  %v294_v6 = vpack.c.bf16 %v290_v4, %v290_v4  ;;  %v521_v16 = vld [vmem:[%s1576_s4] sm:$0xff]  ;;  %v522_v17 = vld [vmem:[%s1576_s4 + $0x8] sm:$0xff]  ;;  %v524_v19 = vld [vmem:[%s1576_s4 + $0x18] sm:$0xff] }
  0x11   : > { %v525_v20 = vld [vmem:[%s1576_s4 + $0x20] sm:$0xff]  ;;  %v1208_v21 = vld [vmem:[%s1573_s1 + $0x10] sm:$0xff]   ;;  %v860_v23 = vld [vmem:[%s1577_s5 + $0x8] sm:$0xff] }
  0x12   : > { %v295_v8 = vpack.c.bf16 %v292_v5, %v292_v5  ;;  %v387_v9 = vsel %vm385_vm0, %v294_v6, 0  ;;  %v859_v22 = vld [vmem:[%s1577_s5] sm:$0xff]  ;;  %v526_v24 = vld [vmem:[%s1576_s4 + $0x28] sm:$0xff]  ;;  %v861_v25 = vld [vmem:[%s1577_s5 + $0x10] sm:$0xff] }
  0x13   : > { %349 = vperm.xlu0 %1203, %v311_v2   ;;  %339 = vperm.xlu1 %1204, %v309_v7   ;;  %v1209_v26 = vld [vmem:[%s1573_s1 + $0x18] sm:$0xff]   ;;  %v527_v27 = vld [vmem:[%s1576_s4 + $0x30] sm:$0xff]  ;;  %v863_v30 = vld [vmem:[%s1577_s5 + $0x20] sm:$0xff] }
  0x14   : > { %1145 = vmatprep.subr.msk.bf16.mxu0 %vm385_vm0, %v295_v8  ;;  %v862_v28 = vld [vmem:[%s1577_s5 + $0x18] sm:$0xff]  ;;  %v529_v31 = vld [vmem:[%s1576_s4 + $0x40] sm:$0xff]  ;;  %v864_v32 = vld [vmem:[%s1577_s5 + $0x28] sm:$0xff] }
  0x15   : > { %407 = vmatpush1.bf16.msra.mxu0 %v387_v9  ;;  %v528_v29 = vld [vmem:[%s1576_s4 + $0x38] sm:$0xff]  ;;  %v530_v33 = vld [vmem:[%s1576_s4 + $0x48] sm:$0xff]  ;;  %v865_v34 = vld [vmem:[%s1577_s5 + $0x30] sm:$0xff] }
  0x16   : > { %v531_v35 = vld [vmem:[%s1576_s4 + $0x50] sm:$0xff]  ;;  %v866_v36 = vld [vmem:[%s1577_s5 + $0x38] sm:$0xff]  ;;  %v867_v38 = vld [vmem:[%s1577_s5 + $0x40] sm:$0xff] }
  0x17   : > { %324 = vperm.xlu0 %1203, %v306_v10   ;;  %329 = vperm.xlu1 %1204, %v307_v12   ;;  %v532_v37 = vld [vmem:[%s1576_s4 + $0x58] sm:$0xff]  ;;  %v533_v39 = vld [vmem:[%s1576_s4 + $0x60] sm:$0xff]  ;;  %v868_v40 = vld [vmem:[%s1577_s5 + $0x48] sm:$0xff] }
  0x18   : > { %1146 = vmatmul.mubr.msk.bf16.vlgmr.msra.gmra.mxu0 %vm372_vm1, %v1206_v11  ;;  %v534_v41 = vld [vmem:[%s1576_s4 + $0x68] sm:$0xff]  ;;  %v869_v42 = vld [vmem:[%s1577_s5 + $0x50] sm:$0xff]  ;;  %v870_v44 = vld [vmem:[%s1577_s5 + $0x58] sm:$0xff] }
  0x19   : > { %434 = vmatprep.mubr.bf16.mxu0 %v1242_v0  ;;  %v535_v43 = vld [vmem:[%s1576_s4 + $0x70] sm:$0xff]  ;;  %v536_v45 = vld [vmem:[%s1576_s4 + $0x78] sm:$0xff]  ;;  %v871_v46 = vld [vmem:[%s1577_s5 + $0x60] sm:$0xff] }
  0x1a   : > { %v872_v47 = vld [vmem:[%s1577_s5 + $0x68] sm:$0xff]  ;;  %v873_v48 = vld [vmem:[%s1577_s5 + $0x70] sm:$0xff]  ;;  %v874_v49 = vld [vmem:[%s1577_s5 + $0x78] sm:$0xff] }
  0x1b   : > { %314 = vperm.xlu0 %1203, %v304_v13   ;;  %319 = vperm.xlu1 %1204, %v305_v14  }
  0x1f   : > { %539 = vperm.xlu0 %1203, %v521_v16   ;;  %544 = vperm.xlu1 %1204, %v522_v17  }
  0x20   : > { %1147 = vmatmul.mubr.msk.bf16.gmra.mxu0 %vm372_vm1, %v1207_v15 }
  0x21   : > { %444 = vmatprep.mubr.bf16.mxu0 %v1242_v0 }
  0x23   : > { %549 = vperm.xlu0 %1203, %v523_v18   ;;  %554 = vperm.xlu1 %1204, %v524_v19  }
  0x27   : > { %559 = vperm.xlu0 %1203, %v525_v20   ;;  %877 = vperm.xlu1 %1204, %v859_v22  }
  0x28   : > { %1148 = vmatmul.mubr.msk.bf16.gmra.mxu0 %vm372_vm1, %v1208_v21 }
  0x29   : > { %454 = vmatprep.mubr.bf16.mxu0 %v1242_v0 }
  0x2b   : > { %882 = vperm.xlu0 %1203, %v860_v23   ;;  %564 = vperm.xlu1 %1204, %v526_v24  }
  0x2f   : > { %887 = vperm.xlu0 %1203, %v861_v25   ;;  %569 = vperm.xlu1 %1204, %v527_v27  }
  0x30   : > { %1149 = vmatmul.mubr.msk.bf16.gmra.mxu0 %vm372_vm1, %v1209_v26 }
  0x31   : > { %714 = vmatprep.mubr.bf16.mxu0 %v1242_v0 }
  0x33   : > { %892 = vperm.xlu0 %1203, %v862_v28   ;;  %574 = vperm.xlu1 %1204, %v528_v29  }
  0x37   : > { %897 = vperm.xlu0 %1203, %v863_v30   ;;  %579 = vperm.xlu1 %1204, %v529_v31  }
  0x3b   : > { %902 = vperm.xlu0 %1203, %v864_v32   ;;  %584 = vperm.xlu1 %1204, %v530_v33  }
  0x3f   : > { %907 = vperm.xlu0 %1203, %v865_v34   ;;  %589 = vperm.xlu1 %1204, %v531_v35  }
  0x43   : > { %912 = vperm.xlu0 %1203, %v866_v36   ;;  %594 = vperm.xlu1 %1204, %v532_v37  }
  0x47   : > { %917 = vperm.xlu0 %1203, %v867_v38   ;;  %599 = vperm.xlu1 %1204, %v533_v39  }
  0x4b   : > { %922 = vperm.xlu0 %1203, %v868_v40   ;;  %604 = vperm.xlu1 %1204, %v534_v41  }
  0x4f   : > { %927 = vperm.xlu0 %1203, %v869_v42   ;;  %609 = vperm.xlu1 %1204, %v535_v43  }
  0x53   : > { %932 = vperm.xlu0 %1203, %v870_v44   ;;  %614 = vperm.xlu1 %1204, %v536_v45  }
  0x57   : > { %937 = vperm.xlu0 %1203, %v871_v46   ;;  %942 = vperm.xlu1 %1204, %v872_v47  }
  0x5b   : > { %947 = vperm.xlu0 %1203, %v873_v48   ;;  %952 = vperm.xlu1 %1204, %v874_v49  }
  0x8a   : > { %v335_v58 = vpop.permute.xlu1 %334  ;;  %v345_v60 = vpop.permute.xlu0 %344 }
  0x8e   : > { %v340_v63 = vpop.permute.xlu1 %339  ;;  %v350_v2 = vpop.permute.xlu0 %349 }
  0x92   : > { %v330_v5 = vpop.permute.xlu1 %329  ;;  %v325_v12 = vpop.permute.xlu0 %324 }
  0x96   : > { %v320_v22 = vpop.permute.xlu1 %319  ;;  %v315_v34 = vpop.permute.xlu0 %314 }
  0xd8   : > { %v1447_v50 = vpop.f32.mrf.mxu0 }
  0xd9   : > { %v427_v49 = vadd.f32 %v1447_v50, %v315_v34 }
  0xda   : > { %v428_v51 = vpop.f32.mrf.mxu0 }
  0xdb   : > { %v429_v38 = vadd.f32 %v428_v51, %v315_v34 }
  0xdc   : > { %v430_v52 = vpop.f32.mrf.mxu0 }
  0xdd   : > { %v431_v42 = vadd.f32 %v430_v52, %v320_v22 }
  0xde   : > { %v432_v53 = vpop.f32.mrf.mxu0 }
  0xdf   : > { %v433_v26 = vadd.f32 %v432_v53, %v320_v22 }
  0xe0   : > { %v436_v54 = vpop.f32.mrf.mxu0 }
  0xe1   : > { %v437_v35 = vadd.f32 %v436_v54, %v325_v12  ;;  %v468_v46 = vmul.f32 0.2, %v433_v26  ;;  %v466_v54 = vmul.f32 0.2, %v429_v38 }
  0xe2   : > { %v438_v55 = vpop.f32.mrf.mxu0 }
  0xe3   : > { %v439_v23 = vadd.f32 %v438_v55, %v325_v12  ;;  %v469_v53 = vmul.f32 0.2, %v437_v35  ;;  %v540_v12 = vpop.permute.xlu0 %539 }
  0xe4   : > { %v440_v56 = vpop.f32.mrf.mxu0 }
  0xe5   : > { %v441_v27 = vadd.f32 %v440_v56, %v330_v5  ;;  %v470_v39 = vmul.f32 0.2, %v439_v23  ;;  %v467_v56 = vmul.f32 0.2, %v431_v42 }
  0xe6   : > { %v442_v57 = vpop.f32.mrf.mxu0 }
  0xe7   : > { %v443_v13 = vadd.f32 %v442_v57, %v330_v5  ;;  %v471_v43 = vmul.f32 0.2, %v441_v27  ;;  %v486_v51 = vmax.f32 %v439_v23, %v470_v39  ;;  %v483_v50 = vmax.f32 %v431_v42, %v467_v56  ;;  %v1211_v5 = vld [vmem:[%s1575_s3 + $0x10] sm:$0xff]  }
  0xe8   : > { %v446_v59 = vpop.f32.mrf.mxu0 }
  0xe9   : > { %v447_v20 = vadd.f32 %v446_v59, %v335_v58  ;;  %v472_v30 = vmul.f32 0.2, %v443_v13  ;;  %v487_v52 = vmax.f32 %v441_v27, %v471_v43 }
  0xea   : > { %v448_v61 = vpop.f32.mrf.mxu0 }
  0xeb   : > { %v449_v10 = vadd.f32 %v448_v61, %v335_v58  ;;  %v473_v36 = vmul.f32 0.2, %v447_v20  ;;  %v488_v47 = vmax.f32 %v443_v13, %v472_v30  ;;  %v484_v58 = vmax.f32 %v433_v26, %v468_v46  ;;  %v545_v13 = vpop.permute.xlu1 %544 }
  0xec   : > { %v450_v62 = vpop.f32.mrf.mxu0  ;;  %v485_v61 = vmax.f32 %v437_v35, %v469_v53 }
  0xed   : > { %v451_v14 = vadd.f32 %v450_v62, %v340_v63  ;;  %v474_v24 = vmul.f32 0.2, %v449_v10  ;;  %v489_v55 = vmax.f32 %v447_v20, %v473_v36  ;;  %v516_v59 = vpack.c.bf16 %v488_v47, %v486_v51 }
  0xee   : > { %v452_v1 = vpop.f32.mrf.mxu0  ;;  %v482_v62 = vmax.f32 %v429_v38, %v466_v54 }
  0xef   : > { %v453_v6 = vadd.f32 %v452_v1, %v340_v63  ;;  %v475_v28 = vmul.f32 0.2, %v451_v14  ;;  %v490_v40 = vmax.f32 %v449_v10, %v474_v24  ;;  %v515_v63 = vpack.c.bf16 %v487_v52, %v485_v61  ;;  %v1216_v10 = vld [vmem:[%s1575_s3 + $0x30] sm:$0xff]  }
  0xf0   : > { %v456_v3 = vpop.f32.mrf.mxu0  ;;  %v514_v1 = vpack.c.bf16 %v484_v58, %v482_v62 }
  0xf1   : > { %v457_v8 = vadd.f32 %v456_v3, %v345_v60  ;;  %v476_v16 = vmul.f32 0.2, %v453_v6  ;;  %v491_v44 = vmax.f32 %v451_v14, %v475_v28  ;;  %v550_v14 = vpop.permute.xlu0 %549 }
  0xf2   : > { %v458_v4 = vpop.f32.mrf.mxu0 }
  0xf3   : > { %v459_v7 = vadd.f32 %v458_v4, %v345_v60  ;;  %v477_v21 = vmul.f32 0.2, %v457_v8  ;;  %v492_v31 = vmax.f32 %v453_v6, %v476_v16  ;;  %v517_v57 = vpack.c.bf16 %v491_v44, %v489_v55  ;;  %v1210_v4 = vld [vmem:[%s1575_s3] sm:$0xff]   ;;  %v1212_v6 = vld [vmem:[%s1575_s3 + $0x8] sm:$0xff]  }
  0xf4   : > { %v460_v9 = vpop.f32.mrf.mxu0  ;;  %v465_v60 = vmul.f32 0.2, %v427_v49 }
  0xf5   : > { %v461_v11 = vadd.f32 %v460_v9, %v350_v2  ;;  %v478_v17 = vmul.f32 0.2, %v459_v7  ;;  %v493_v37 = vmax.f32 %v457_v8, %v477_v21  ;;  %v518_v48 = vpack.c.bf16 %v492_v31, %v490_v40  ;;  %v1214_v8 = vld [vmem:[%s1575_s3 + $0x20] sm:$0xff]   ;;  %v1215_v9 = vld [vmem:[%s1575_s3 + $0x28] sm:$0xff]   ;;  %v560_v16 = vpop.permute.xlu0 %559 }
  0xf6   : > { %v462_v15 = vpop.f32.mrf.mxu0 }
  0xf7   : > { %v479_v18 = vmul.f32 0.2, %v461_v11  ;;  %v463_v19 = vadd.f32 %v462_v15, %v350_v2  ;;  %v494_v32 = vmax.f32 %v459_v7, %v478_v17  ;;  %v481_v2 = vmax.f32 %v427_v49, %v465_v60  ;;  %v1213_v7 = vld [vmem:[%s1575_s3 + $0x18] sm:$0xff]   ;;  %v1488_v15 = vpop.permute.xlu1 %554 }
  0xf9   : > { %v480_v25 = vmul.f32 0.2, %v463_v19  ;;  %v495_v29 = vmax.f32 %v461_v11, %v479_v18  ;;  %v513_v3 = vpack.c.bf16 %v483_v50, %v481_v2  ;;  %v1217_v11 = vld [vmem:[%s1575_s3 + $0x38] sm:$0xff]   ;;  %v883_v18 = vpop.permute.xlu0 %882 }
  0xfb   : > { %v496_v33 = vmax.f32 %v463_v19, %v480_v25  ;;  %v519_v45 = vpack.c.bf16 %v495_v29, %v493_v37  ;;  %v878_v17 = vpop.permute.xlu1 %877 }
  0xfd   : > { %v520_v41 = vpack.c.bf16 %v496_v33, %v494_v32  ;;  %v1490_v20 = vpop.permute.xlu0 %887 }
  0xff   : > { %690 = vmatprep.subr.bf16.mxu0 %v520_v41  ;;  %1169 = vmatprep.subr.bf16.mxu1 %v520_v41  ;;  %v565_v19 = vpop.permute.xlu1 %564 }
 0x100   : > { %691 = vmatpush1.bf16.msra.mxu0 %v519_v45  ;;  %1173 = vmatpush1.bf16.msra.mxu1 %v519_v45 }
 0x101   : > { %692 = vmatprep.subr.bf16.mxu0 %v518_v48  ;;  %1170 = vmatprep.subr.bf16.mxu1 %v518_v48  ;;  %v1492_v22 = vpop.permute.xlu0 %892 }
 0x103   : > { %v570_v21 = vpop.permute.xlu1 %569 }
 0x104   : > { %693 = vmatpush1.bf16.msra.mxu0 %v517_v57  ;;  %1174 = vmatpush1.bf16.msra.mxu1 %v517_v57 }
 0x105   : > { %694 = vmatprep.subr.bf16.mxu0 %v516_v59  ;;  %1171 = vmatprep.subr.bf16.mxu1 %v516_v59  ;;  %v1496_v23 = vpop.permute.xlu0 %897 }
 0x108   : > { %695 = vmatpush1.bf16.msra.mxu0 %v515_v63  ;;  %1175 = vmatpush1.bf16.msra.mxu1 %v515_v63 }
 0x109   : > { %696 = vmatprep.subr.bf16.mxu0 %v514_v1  ;;  %1172 = vmatprep.subr.bf16.mxu1 %v514_v1  ;;  %v1500_v25 = vpop.permute.xlu0 %902 }
 0x10c   : > { %697 = vmatpush1.bf16.msra.mxu0 %v513_v3  ;;  %1176 = vmatpush1.bf16.msra.mxu1 %v513_v3 }
 0x10d   : > { %v1504_v37 = vpop.permute.xlu0 %907 }
 0x10f   : > { %1158 = vmatmul.mubr.msk.bf16.vlgmr.msra.gmra.mxu0 %vm657_vm2, %v1210_v4  ;;  %1160 = vmatmul.mubr.msk.bf16.vlgmr.msra.gmra.mxu1 %vm657_vm2, %v1211_v5 }
 0x110   : > { %724 = vmatprep.mubr.bf16.mxu0 %v1242_v0  ;;  %744 = vmatprep.mubr.bf16.mxu1 %v1242_v0 }
 0x111   : > { %v1515_v59 = vpop.permute.xlu0 %912 }
 0x117   : > { %1159 = vmatmul.mubr.msk.bf16.gmra.mxu0 %vm657_vm2, %v1212_v6  ;;  %1161 = vmatmul.mubr.msk.bf16.gmra.mxu1 %vm657_vm2, %v1213_v7 }
 0x118   : > { %754 = vmatprep.mubr.bf16.mxu1 %v1242_v0 }
 0x11f   : > { %1162 = vmatmul.mubr.msk.bf16.gmra.mxu1 %vm657_vm2, %v1214_v8 }
 0x120   : > { %764 = vmatprep.mubr.bf16.mxu1 %v1242_v0 }
 0x127   : > { %1163 = vmatmul.mubr.msk.bf16.gmra.mxu1 %vm657_vm2, %v1215_v9 }
 0x128   : > { %774 = vmatprep.mubr.bf16.mxu1 %v1242_v0 }
 0x12f   : > { %1164 = vmatmul.mubr.msk.bf16.gmra.mxu1 %vm657_vm2, %v1216_v10 }
 0x130   : > { %784 = vmatprep.mubr.bf16.mxu1 %v1242_v0  ;;  %v1494_v0 = vpop.permute.xlu1 %574 }
 0x134   : > { %v1498_v24 = vpop.permute.xlu1 %579 }
 0x137   : > { %1165 = vmatmul.mubr.msk.bf16.gmra.mxu1 %vm657_vm2, %v1217_v11 }
 0x138   : > { %v1502_v28 = vpop.permute.xlu1 %584 }
 0x13c   : > { %v1508_v43 = vpop.permute.xlu1 %589 }
 0x140   : > { %v1519_v4 = vpop.permute.xlu1 %594 }
 0x1cf   : > { %v716_v26 = vpop.f32.mrf.mxu0  ;;  %v736_v27 = vpop.f32.mrf.mxu1 }
 0x1d0   : > { %v717_v29 = vadd.f32 %v716_v26, %v540_v12  ;;  %v737_v30 = vadd.f32 %v736_v27, %v560_v16 }
 0x1d1   : > { %v718_v31 = vpop.f32.mrf.mxu0  ;;  %v738_v32 = vpop.f32.mrf.mxu1 }
 0x1d2   : > { %v719_v33 = vadd.f32 %v718_v31, %v540_v12  ;;  %v795_v34 = vmul.f32 0.2, %v717_v29  ;;  %v803_v38 = vmul.f32 0.2, %v737_v30  ;;  %v1506_v39 = vadd.f32 %v738_v32, %v560_v16 }
 0x1d3   : > { %v720_v35 = vpop.f32.mrf.mxu0  ;;  %v740_v36 = vpop.f32.mrf.mxu1 }
 0x1d4   : > { %v721_v40 = vadd.f32 %v720_v35, %v545_v13  ;;  %v796_v44 = vmul.f32 0.2, %v719_v33  ;;  %v827_v45 = vmax.f32 %v717_v29, %v795_v34  ;;  %v835_v53 = vmax.f32 %v737_v30, %v803_v38  ;;  %v1529_v34 = vpop.permute.xlu0 %917 }
 0x1d5   : > { %v722_v41 = vpop.f32.mrf.mxu0  ;;  %v742_v42 = vpop.f32.mrf.mxu1  ;;  %v1511_v54 = vmul.f32 0.2, %v1506_v39  ;;  %v1513_v56 = vadd.f32 %v740_v36, %v565_v19 }
 0x1d6   : > { %v797_v46 = vmul.f32 0.2, %v721_v40  ;;  %v723_v47 = vadd.f32 %v722_v41, %v545_v13  ;;  %v828_v60 = vmax.f32 %v719_v33, %v796_v44  ;;  %v955_v50 = vmul.f32 %v878_v17, %v827_v45 }
 0x1d7   : > { %v726_v48 = vpop.f32.mrf.mxu0  ;;  %v746_v49 = vpop.f32.mrf.mxu1  ;;  %v1517_v1 = vadd.f32 %v742_v42, %v565_v19  ;;  %v963_v9 = vmul.f32 %v1496_v23, %v835_v53  ;;  %v836_v10 = vmax.f32 %v1506_v39, %v1511_v54  ;;  %v805_v11 = vmul.f32 0.2, %v1513_v56 }
 0x1d8   : > { %v727_v55 = vadd.f32 %v726_v48, %v550_v14  ;;  %v829_v51 = vmax.f32 %v721_v40, %v797_v46  ;;  %v798_v52 = vmul.f32 0.2, %v723_v47  ;;  %v747_v7 = vadd.f32 %v746_v49, %v570_v21  ;;  %v1537_v46 = vpop.permute.xlu1 %599 }
 0x1d9   : > { %v728_v57 = vpop.f32.mrf.mxu0  ;;  %v748_v58 = vpop.f32.mrf.mxu1  ;;  %v956_v16 = vmul.f32 %v878_v17, %v828_v60  ;;  %v806_v36 = vmul.f32 0.2, %v1517_v1  ;;  %v837_v42 = vmax.f32 %v1513_v56, %v805_v11 }
 0x1da   : > { %v799_v61 = vmul.f32 0.2, %v727_v55  ;;  %v729_v62 = vadd.f32 %v728_v57, %v550_v14  ;;  %v830_v63 = vmax.f32 %v723_v47, %v798_v52  ;;  %v957_v5 = vmul.f32 %v883_v18, %v829_v51  ;;  %v923_v60 = vpop.permute.xlu0 %922 }
 0x1db   : > { %v730_v2 = vpop.f32.mrf.mxu0  ;;  %v750_v3 = vpop.f32.mrf.mxu1  ;;  %v749_v27 = vadd.f32 %v748_v58, %v570_v21  ;;  %v807_v38 = vmul.f32 0.2, %v747_v7 }
 0x1dc   : > { %v831_v6 = vmax.f32 %v727_v55, %v799_v61  ;;  %v800_v8 = vmul.f32 0.2, %v729_v62  ;;  %v731_v12 = vadd.f32 %v730_v2, %v1488_v15  ;;  %v958_v19 = vmul.f32 %v883_v18, %v830_v63 }
 0x1dd   : > { %v732_v13 = vpop.f32.mrf.mxu0  ;;  %v752_v14 = vpop.f32.mrf.mxu1  ;;  %v751_v31 = vadd.f32 %v750_v3, %v1494_v0  ;;  %v987_v35 = vadd.f32 %v957_v5, %v955_v50  ;;  %v839_v55 = vmax.f32 %v747_v7, %v807_v38  ;;  %v964_v61 = vmul.f32 %v1496_v23, %v836_v10 }
 0x1de   : > { %v832_v26 = vmax.f32 %v729_v62, %v800_v8  ;;  %v959_v29 = vmul.f32 %v1490_v20, %v831_v6  ;;  %v801_v30 = vmul.f32 0.2, %v731_v12  ;;  %v733_v32 = vadd.f32 %v732_v13, %v1488_v15 }
 0x1df   : > { %v756_v33 = vpop.f32.mrf.mxu1  ;;  %v753_v39 = vadd.f32 %v752_v14, %v1494_v0  ;;  %v1008_v44 = vadd.f32 %v958_v19, %v956_v16  ;;  %v808_v15 = vmul.f32 0.2, %v749_v27  ;;  %v809_v49 = vmul.f32 0.2, %v751_v31 }
 0x1e0   : > { %v960_v17 = vmul.f32 %v1490_v20, %v832_v26  ;;  %v833_v18 = vmax.f32 %v731_v12, %v801_v30  ;;  %v802_v21 = vmul.f32 0.2, %v733_v32  ;;  %v757_v40 = vadd.f32 %v756_v33, %v1498_v24  ;;  %v605_v12 = vpop.permute.xlu1 %604 }
 0x1e1   : > { %v758_v41 = vpop.f32.mrf.mxu1  ;;  %v988_v47 = vadd.f32 %v987_v35, %v959_v29  ;;  %v838_v20 = vmax.f32 %v1517_v1, %v806_v36  ;;  %v810_v54 = vmul.f32 0.2, %v753_v39  ;;  %v840_v62 = vmax.f32 %v749_v27, %v808_v15 }
 0x1e2   : > { %v759_v45 = vadd.f32 %v758_v41, %v1498_v24  ;;  %v961_v48 = vmul.f32 %v1492_v22, %v833_v18  ;;  %v834_v0 = vmax.f32 %v733_v32, %v802_v21  ;;  %v811_v51 = vmul.f32 0.2, %v757_v40 }
 0x1e3   : > { %v760_v53 = vpop.f32.mrf.mxu1  ;;  %v1009_v52 = vadd.f32 %v1008_v44, %v960_v17  ;;  %v965_v2 = vmul.f32 %v1500_v25, %v837_v42  ;;  %v841_v3 = vmax.f32 %v751_v31, %v809_v49  ;;  %v966_v7 = vmul.f32 %v1500_v25, %v838_v20  ;;  %v928_v31 = vpop.permute.xlu0 %927 }
 0x1e4   : > { %v989_v57 = vadd.f32 %v988_v47, %v961_v48  ;;  %v962_v56 = vmul.f32 %v1492_v22, %v834_v0  ;;  %v761_v58 = vadd.f32 %v760_v53, %v1502_v28  ;;  %v812_v50 = vmul.f32 0.2, %v759_v45  ;;  %v610_v41 = vpop.permute.xlu1 %609 }
 0x1e5   : > { %v762_v24 = vpop.f32.mrf.mxu1  ;;  %v967_v22 = vmul.f32 %v1504_v37, %v839_v55  ;;  %v842_v8 = vmax.f32 %v753_v39, %v810_v54  ;;  %v843_v11 = vmax.f32 %v757_v40, %v811_v51  ;;  %v969_v26 = vmul.f32 %v1515_v59, %v841_v3 }
 0x1e6   : > { %v763_v63 = vadd.f32 %v762_v24, %v1502_v28  ;;  %v990_v1 = vadd.f32 %v989_v57, %v963_v9  ;;  %v1010_v5 = vadd.f32 %v1009_v52, %v962_v56  ;;  %v813_v23 = vmul.f32 0.2, %v761_v58 }
 0x1e7   : > { %v766_v6 = vpop.f32.mrf.mxu1  ;;  %v968_v28 = vmul.f32 %v1504_v37, %v840_v62  ;;  %v844_v19 = vmax.f32 %v759_v45, %v812_v50  ;;  %v970_v32 = vmul.f32 %v1515_v59, %v842_v8  ;;  %v971_v33 = vmul.f32 %v1529_v34, %v843_v11  ;;  %v933_v20 = vpop.permute.xlu0 %932 }
 0x1e8   : > { %v991_v13 = vadd.f32 %v990_v1, %v965_v2  ;;  %v1011_v14 = vadd.f32 %v1010_v5, %v964_v61  ;;  %v767_v10 = vadd.f32 %v766_v6, %v1508_v43  ;;  %v814_v9 = vmul.f32 0.2, %v763_v63  ;;  %v615_v24 = vpop.permute.xlu1 %614 }
 0x1e9   : > { %v768_v16 = vpop.f32.mrf.mxu1  ;;  %v845_v39 = vmax.f32 %v761_v58, %v813_v23  ;;  %v972_v18 = vmul.f32 %v1529_v34, %v844_v19 }
 0x1ea   : > { %v992_v27 = vadd.f32 %v991_v13, %v967_v22  ;;  %v1012_v29 = vadd.f32 %v1011_v14, %v966_v7  ;;  %v769_v25 = vadd.f32 %v768_v16, %v1508_v43  ;;  %v815_v37 = vmul.f32 0.2, %v767_v10 }
 0x1eb   : > { %v770_v30 = vpop.f32.mrf.mxu1  ;;  %v846_v21 = vmax.f32 %v763_v63, %v814_v9  ;;  %v973_v48 = vmul.f32 %v923_v60, %v845_v39  ;;  %v938_v8 = vpop.permute.xlu0 %937 }
 0x1ec   : > { %v771_v35 = vadd.f32 %v770_v30, %v1519_v4  ;;  %v993_v36 = vadd.f32 %v992_v27, %v969_v26  ;;  %v1013_v38 = vadd.f32 %v1012_v29, %v968_v28  ;;  %v816_v44 = vmul.f32 0.2, %v769_v25  ;;  %v943_v9 = vpop.permute.xlu1 %942 }
 0x1ed   : > { %v772_v17 = vpop.f32.mrf.mxu1  ;;  %v847_v49 = vmax.f32 %v767_v10, %v815_v37  ;;  %v974_v51 = vmul.f32 %v923_v60, %v846_v21 }
 0x1ee   : > { %v773_v40 = vadd.f32 %v772_v17, %v1519_v4  ;;  %v1014_v43 = vadd.f32 %v1013_v38, %v970_v32  ;;  %v994_v42 = vadd.f32 %v993_v36, %v971_v33  ;;  %v817_v15 = vmul.f32 0.2, %v771_v35 }
 0x1ef   : > { %v776_v59 = vpop.f32.mrf.mxu1  ;;  %v848_v4 = vmax.f32 %v769_v25, %v816_v44  ;;  %v975_v62 = vmul.f32 %v928_v31, %v847_v49  ;;  %v948_v38 = vpop.permute.xlu0 %947 }
 0x1f0   : > { %v777_v45 = vadd.f32 %v776_v59, %v1537_v46  ;;  %v1015_v47 = vadd.f32 %v1014_v43, %v972_v18  ;;  %v818_v0 = vmul.f32 0.2, %v773_v40  ;;  %v995_v54 = vadd.f32 %v994_v42, %v973_v48 }
 0x1f1   : > { %v778_v53 = vpop.f32.mrf.mxu1  ;;  %v849_v52 = vmax.f32 %v771_v35, %v817_v15  ;;  %v976_v6 = vmul.f32 %v928_v31, %v848_v4  ;;  %v953_v15 = vpop.permute.xlu1 %952 }
 0x1f2   : > { %v819_v55 = vmul.f32 0.2, %v777_v45  ;;  %v779_v34 = vadd.f32 %v778_v53, %v1537_v46  ;;  %v1016_v61 = vadd.f32 %v1015_v47, %v974_v51  ;;  %v850_v50 = vmax.f32 %v773_v40, %v818_v0 }
 0x1f3   : > { %v780_v57 = vpop.f32.mrf.mxu1  ;;  %v996_v5 = vadd.f32 %v995_v54, %v975_v62  ;;  %v977_v7 = vmul.f32 %v933_v20, %v849_v52  ;;  %v1243_v52 = vmov 1966171168  }
 0x1f4   : > { %v820_v56 = vmul.f32 0.2, %v779_v34  ;;  %v781_v58 = vadd.f32 %v780_v57, %v605_v12  ;;  %v851_v63 = vmax.f32 %v777_v45, %v819_v55  ;;  %v1017_v13 = vadd.f32 %v1016_v61, %v976_v6 }
 0x1f5   : > { %v782_v2 = vpop.f32.mrf.mxu1  ;;  %v978_v14 = vmul.f32 %v933_v20, %v850_v50  ;;  %v997_v26 = vadd.f32 %v996_v5, %v977_v7  ;;  %v1033_v57 = vunpack.c.l.s4 %v1243_v52 }
 0x1f6   : > { %v821_v1 = vmul.f32 0.2, %v781_v58  ;;  %v783_v3 = vadd.f32 %v782_v2, %v605_v12  ;;  %v852_v22 = vmax.f32 %v779_v34, %v820_v56  ;;  %v979_v23 = vmul.f32 %v938_v8, %v851_v63 }
 0x1f7   : > { %v786_v46 = vpop.f32.mrf.mxu1  ;;  %v1018_v32 = vadd.f32 %v1017_v13, %v978_v14  ;;  %v1035_v56 = vlaneseq  ;;  %v1034_v50 = vunpack.c.0.s8 %v1033_v57 }
 0x1f8   : > { %v853_v60 = vmax.f32 %v781_v58, %v821_v1  ;;  %v822_v11 = vmul.f32 0.2, %v783_v3  ;;  %v787_v10 = vadd.f32 %v786_v46, %v610_v41  ;;  %v980_v27 = vmul.f32 %v938_v8, %v852_v22 }
 0x1f9   : > { %v788_v16 = vpop.f32.mrf.mxu1  ;;  %v998_v33 = vadd.f32 %v997_v26, %v979_v23  ;;  %v1036_v63 = vshrl.u32 %v1035_v56, 7  ;;  %vm1049_vm3 = vcmp.lt.s32.totalorder %v1035_v56, 256 }
 0x1fa   : > { %v854_v28 = vmax.f32 %v783_v3, %v822_v11  ;;  %v789_v19 = vadd.f32 %v788_v16, %v610_v41  ;;  %v823_v29 = vmul.f32 0.2, %v787_v10  ;;  %v981_v25 = vmul.f32 %v943_v9, %v853_v60 }
 0x1fb   : > { %v790_v12 = vpop.f32.mrf.mxu1  ;;  %v1019_v21 = vadd.f32 %v1018_v32, %v980_v27  ;;  %v1037_v5 = vsub.s32 %v1034_v50, %v1036_v63 }
 0x1fc   : > { %v824_v30 = vmul.f32 0.2, %v789_v19  ;;  %v791_v31 = vadd.f32 %v790_v12, %v615_v24  ;;  %v855_v35 = vmax.f32 %v787_v10, %v823_v29  ;;  %v982_v39 = vmul.f32 %v943_v9, %v854_v28 }
 0x1fd   : > { %v792_v36 = vpop.f32.mrf.mxu1  ;;  %v999_v41 = vadd.f32 %v998_v33, %v981_v25 }
 0x1fe   : > { %v856_v37 = vmax.f32 %v789_v19, %v824_v30  ;;  %v825_v17 = vmul.f32 0.2, %v791_v31  ;;  %v793_v18 = vadd.f32 %v792_v36, %v615_v24  ;;  %v983_v40 = vmul.f32 %v948_v38, %v855_v35 }
 0x1ff   : > { %v1020_v59 = vadd.f32 %v1019_v21, %v982_v39 }
 0x200   : > { %v984_v43 = vmul.f32 %v948_v38, %v856_v37  ;;  %v857_v42 = vmax.f32 %v791_v31, %v825_v17  ;;  %v826_v44 = vmul.f32 0.2, %v793_v18  ;;  %v1000_v45 = vadd.f32 %v999_v41, %v983_v40 }
 0x202   : > { %v985_v47 = vmul.f32 %v953_v15, %v857_v42  ;;  %v858_v48 = vmax.f32 %v793_v18, %v826_v44  ;;  %v1021_v49 = vadd.f32 %v1020_v59, %v984_v43 }
 0x204   : > { %v1001_v0 = vadd.f32 %v1000_v45, %v985_v47  ;;  %v986_v53 = vmul.f32 %v953_v15, %v858_v48 }
 0x206   : > { %v1002_v20 = vrot.slane %v1001_v0, 4  ;;  %v1022_v55 = vadd.f32 %v1021_v49, %v986_v53 }
 0x208   : > { %v1003_v34 = vadd.f32 %v1002_v20, %v1001_v0  ;;  %v1023_v54 = vrot.slane %v1022_v55, 4 }
 0x20a   : > { %v1004_v51 = vrot.slane %v1003_v34, 2  ;;  %v1024_v4 = vadd.f32 %v1023_v54, %v1022_v55 }
 0x20c   : > { %v1005_v58 = vadd.f32 %v1004_v51, %v1003_v34  ;;  %v1025_v24 = vrot.slane %v1024_v4, 2 }
 0x20e   : > { %v1006_v61 = vrot.slane %v1005_v58, 1  ;;  %v1026_v62 = vadd.f32 %v1025_v24, %v1024_v4 }
 0x210   : > { %v1027_v2 = vrot.slane %v1026_v62, 1  ;;  %v1007_v1 = vadd.f32 %v1006_v61, %v1005_v58 }
 0x212   : > { %v1028_v3 = vadd.f32 %v1027_v2, %v1026_v62 }
 0x214   : > { %v1031_v6 = vcombine.low %v1007_v1, %v1028_v3 }
 0x216   : > { %v1038_v7 = vrot.slane %v1031_v6, %v1037_v5 }
 0x218   : > { %v1045_v22 = vrot.slane %v1038_v7, %v1037_v5 }
 0x21a   : > { %1051 = vst.msk [vmem:[%s287_s12] sm:$0x3] %vm1049_vm3, %v1045_v22 }
 0x21b PF: > { %s16_s23 = sadd.s32 1, %s1240_s23   ;;  %s1579_s21 = smov %s1236_s22 }
 0x21c   : > { %p13_p5 = scmp.ge.s32.totalorder %s16_s23, 4   ;;  %s1580_s22 = smov %s1582_s24 }
 0x21e   :  { %15 = sbr.rel (!%p13_p5) target bundleno = 2 (0x2), region = 74 }

</bundles_post_ra>
